<compile_context>
chip_gen: v5e
topology: v5e:2x2
jax: 0.10.0
libtpu: 0.0.40
codegen_flags: <defaults>
</compile_context>

<pallas_src>
import functools

import jax
import jax.numpy as jnp
from jax import lax
from jax.experimental import pallas as pl
from jax.experimental.pallas import tpu as pltpu


_VMEM_LIMIT_BYTES = 48 * 1024 * 1024    # < v7x's 64 MiB physical VMEM, > v5e/v6e scoped defaults
_VMEM_BLOCK_BUDGET = 20 * 1024 * 1024   # target working set (blocks + temps, double-buffered)


def _pick_tile(extent, budget_tiles):
    """Largest tile <= budget_tiles, preferring one that divides `extent` (no ragged edge)."""
    t_max = max(1, min(extent, budget_tiles))
    for t in range(t_max, max(1, t_max // 2) - 1, -1):
        if extent % t == 0:
            return t
    return t_max


# --------------------------------------------------------------------------------------
# Kernels
# --------------------------------------------------------------------------------------
def _concat_pool_kernel_stride_eq(x_ref, o_ref, *, k, C):
    """stride == kernel_size path.

    x_ref: (1, TH, k, W_out, k*C)  window taps are contiguous selections
    o_ref: (1, TH, 2, W_out, C)    [:, :, 0] = max-pool, [:, :, 1] = avg-pool
                                   (both lane-dense, aligned full-width stores)
    """
    inv = 1.0 / (k * k)
    mx = None
    sm = None
    for kh in range(k):
        slab = x_ref[0, :, kh, :, :]              # (TH, W_out, k*C) contiguous VMEM load
        for kw in range(k):
            t = slab[:, :, kw * C:(kw + 1) * C]   # static lane-range select, no strides
            if mx is None:
                mx = t                            # seed max from first tap (no -inf)
                sm = t.astype(jnp.float32)
            else:
                mx = jnp.maximum(mx, t)           # stays in input dtype (bf16 ok on v6e/v7x)
                sm = sm + t.astype(jnp.float32)
    o_ref[0, :, 0, :, :] = mx.astype(o_ref.dtype)
    o_ref[0, :, 1, :, :] = (sm * inv).astype(o_ref.dtype)


def _concat_pool_kernel_general(x_ref, o_ref, *, k, s, H_out, W_out):
    """General-stride fallback (stride != kernel_size), channel-tiled NHWC per batch.

    x_ref: (1, H, W, TC); strided taps hit H (outer, free) and W (sublane), never lanes.
    o_ref: (1, H_out, 2, W_out, TC)
    """
    # TODO(synk): overlapping-window H tiling for stride != kernel_size (needs BoundedSlice specs).
    x = x_ref[0]  # (H, W, TC)
    TC = x.shape[-1]
    inv = 1.0 / (k * k)
    mx = None
    sm = None
    for kh in range(k):
        for kw in range(k):
            t = lax.slice(
                x,
                (kh, kw, 0),
                (kh + s * (H_out - 1) + 1, kw + s * (W_out - 1) + 1, TC),
                (s, s, 1),
            )
            if mx is None:
                mx = t
                sm = t.astype(jnp.float32)
            else:
                mx = jnp.maximum(mx, t)
                sm = sm + t.astype(jnp.float32)
    o_ref[0, :, 0, :, :] = mx.astype(o_ref.dtype)
    o_ref[0, :, 1, :, :] = (sm * inv).astype(o_ref.dtype)


# --------------------------------------------------------------------------------------
# pallas_call wrappers
# --------------------------------------------------------------------------------------
def _concat_pool_stride_eq(x_nhwc, k, N, C, H_out, W_out, dtype):
    # floor-mode crop, then a FREE reshape that puts the window taps on their own axes.
    x6 = x_nhwc[:, :H_out * k, :W_out * k, :].reshape(N, H_out, k, W_out, k * C)

    itemsize = jnp.dtype(dtype).itemsize
    row = W_out * C
    in_bytes = 2 * (k * k) * row * itemsize           # input block, double-buffered
    out_bytes = 2 * 2 * row * itemsize                # fused (max, avg) output, double-buffered
    tmp_bytes = row * ((k + 1) * itemsize + 4)        # slab + max + f32 sum temporaries
    per_row = max(1, in_bytes + out_bytes + tmp_bytes)

    TH = _pick_tile(H_out, _VMEM_BLOCK_BUDGET // per_row)
    grid = (N, pl.cdiv(H_out, TH))

    kernel = functools.partial(_concat_pool_kernel_stride_eq, k=k, C=C)
    out_sds = jax.ShapeDtypeStruct((N, H_out, 2, W_out, C), dtype)
    return pl.pallas_call(
        kernel,
        out_shape=out_sds,
        grid=grid,
        in_specs=[pl.BlockSpec((1, TH, k, W_out, k * C), lambda n, h: (n, h, 0, 0, 0))],
        out_specs=pl.BlockSpec((1, TH, 2, W_out, C), lambda n, h: (n, h, 0, 0, 0)),
        compiler_params=pltpu.CompilerParams(
            dimension_semantics=("parallel", "parallel"),
            vmem_limit_bytes=_VMEM_LIMIT_BYTES,
        ),
    )(x6)


def _concat_pool_general(x_nhwc, k, s, N, C, H, W, H_out, W_out, dtype):
    itemsize = jnp.dtype(dtype).itemsize
    per_c = (2 * H * W + (2 * 2 + 2) * H_out * W_out) * itemsize + 4 * H_out * W_out
    TC = _pick_tile(C, _VMEM_BLOCK_BUDGET // max(1, per_c))
    grid = (N, pl.cdiv(C, TC))

    kernel = functools.partial(
        _concat_pool_kernel_general, k=k, s=s, H_out=H_out, W_out=W_out
    )
    out_sds = jax.ShapeDtypeStruct((N, H_out, 2, W_out, C), dtype)
    return pl.pallas_call(
        kernel,
        out_shape=out_sds,
        grid=grid,
        in_specs=[pl.BlockSpec((1, H, W, TC), lambda n, c: (n, 0, 0, c))],
        out_specs=pl.BlockSpec((1, H_out, 2, W_out, TC), lambda n, c: (n, 0, 0, 0, c)),
        compiler_params=pltpu.CompilerParams(
            dimension_semantics=("parallel", "parallel"),
            vmem_limit_bytes=_VMEM_LIMIT_BYTES,
        ),
    )(x_nhwc)


def concat_pool2d(x, kernel_size, stride=None):
    """Pallas implementation of ConcatPool2d.forward for NCHW input x.

    Matches PyTorch defaults: padding=0, ceil_mode=False (floor mode); trailing
    rows/cols that don't fit a full window are dropped, exactly like nn.MaxPool2d /
    nn.AvgPool2d with those defaults.
    """
    if stride is None:
        stride = kernel_size
    k, s = int(kernel_size), int(stride)
    N, C, H, W = x.shape
    assert H >= k and W >= k, "input spatial dims smaller than pooling window"
    H_out = (H - k) // s + 1
    W_out = (W - k) // s + 1

    # channels-last inside the kernel: C -> 128-lane axis, lane-dense loads & stores.
    x_nhwc = jnp.transpose(x, (0, 2, 3, 1))  # (N, H, W, C)

    if s == k:
        out5 = _concat_pool_stride_eq(x_nhwc, k, N, C, H_out, W_out, x.dtype)
    else:
        out5 = _concat_pool_general(x_nhwc, k, s, N, C, H, W, H_out, W_out, x.dtype)

    # (N, H_out, 2, W_out, C) -> (N, 2, C, H_out, W_out) -> (N, 2C, H_out, W_out)
    # single transpose + free reshape; concat already fused into the kernel output.
    return jnp.transpose(out5, (0, 2, 4, 1, 3)).reshape(N, 2 * C, H_out, W_out)


# --------------------------------------------------------------------------------------
# Pure-JAX reference (mirrors torch.cat([MaxPool2d(x), AvgPool2d(x)], 1))
# --------------------------------------------------------------------------------------
def _reference_concat_pool2d(x, kernel_size, stride=None):
    if stride is None:
        stride = kernel_size
    dims = (1, 1, kernel_size, kernel_size)
    strides = (1, 1, stride, stride)
    mp = lax.reduce_window(x, -jnp.inf, lax.max, dims, strides, "VALID")
    ap = lax.reduce_window(x, 0.0, lax.add, dims, strides, "VALID") / (
        kernel_size * kernel_size
    )
    return jnp.concatenate([mp, ap], axis=1)


if __name__ == "__main__":
    key = jax.random.PRNGKey(0)
    N, C, H, W = 2, 4, 16, 16
    x = jax.random.normal(key, (N, C, H, W), dtype=jnp.float32)

    # main path: stride == kernel_size (the nn.*Pool2d default when stride=None)
    k = 2
    out = jax.block_until_ready(concat_pool2d(x, k))
    ref = _reference_concat_pool2d(x, k)
    assert out.shape == (N, 2 * C, H // k, W // k), out.shape
    assert jnp.allclose(out, ref, atol=1e-5, rtol=1e-5), "stride==kernel_size mismatch"

    # general path: stride != kernel_size
    out2 = jax.block_until_ready(concat_pool2d(x, 3, 2))
    ref2 = _reference_concat_pool2d(x, 3, 2)
    assert out2.shape == ref2.shape, (out2.shape, ref2.shape)
    assert jnp.allclose(out2, ref2, atol=1e-5, rtol=1e-5), "general-stride mismatch"

    # bf16 main path (max stays bf16, avg accumulates in f32)
    x_bf = x.astype(jnp.bfloat16)
    out3 = jax.block_until_ready(concat_pool2d(x_bf, k))
    ref3 = _reference_concat_pool2d(x_bf.astype(jnp.float32), k)
    assert jnp.allclose(out3.astype(jnp.float32), ref3, atol=5e-2, rtol=5e-2), "bf16 mismatch"

    print("KERNEL_OK")
</pallas_src>

<mosaic_0001>
module attributes {stable_mosaic.version = 11 : i64} {
  func.func @_concat_pool_kernel_stride_eq(%arg0: i32, %arg1: i32, %arg2: memref<1x8x2x8x8xf32, #tpu.memory_space<vmem>>, %arg3: memref<1x8x2x8x4xf32, #tpu.memory_space<vmem>>) attributes {dimension_semantics = [#tpu.dimension_semantics<parallel>, #tpu.dimension_semantics<parallel>], iteration_bounds = array<i64: 2, 1>, scalar_prefetch = 0 : i64, scratch_operands = 0 : i64, tpu.core_type = #tpu.core_type<tc>, window_params = [{transform_indices = @transform_0, window_bounds = array<i64: 1, 8, 2, 8, 8>}, {transform_indices = @transform_1, window_bounds = array<i64: 1, 8, 2, 8, 4>}]} {
    %c0 = arith.constant 0 : index
    %c0_0 = arith.constant 0 : index
    %c0_1 = arith.constant 0 : index
    %c0_2 = arith.constant 0 : index
    %c0_3 = arith.constant 0 : index
    %0 = vector.load %arg2[%c0, %c0_0, %c0_1, %c0_2, %c0_3] : memref<1x8x2x8x8xf32, #tpu.memory_space<vmem>>, vector<1x8x1x8x8xf32>
    %1 = vector.shape_cast %0 : vector<1x8x1x8x8xf32> to vector<8x8x8xf32>
    %2 = vector.extract_strided_slice %1 {offsets = [0, 0, 0], sizes = [8, 8, 4], strides = [1, 1, 1]} : vector<8x8x8xf32> to vector<8x8x4xf32>
    %3 = vector.extract_strided_slice %1 {offsets = [0, 0, 4], sizes = [8, 8, 4], strides = [1, 1, 1]} : vector<8x8x8xf32> to vector<8x8x4xf32>
    %4 = arith.maximumf %2, %3 : vector<8x8x4xf32>
    %5 = arith.addf %2, %3 : vector<8x8x4xf32>
    %c0_4 = arith.constant 0 : index
    %c0_5 = arith.constant 0 : index
    %c1 = arith.constant 1 : index
    %c0_6 = arith.constant 0 : index
    %c0_7 = arith.constant 0 : index
    %6 = vector.load %arg2[%c0_4, %c0_5, %c1, %c0_6, %c0_7] : memref<1x8x2x8x8xf32, #tpu.memory_space<vmem>>, vector<1x8x1x8x8xf32>
    %7 = vector.shape_cast %6 : vector<1x8x1x8x8xf32> to vector<8x8x8xf32>
    %8 = vector.extract_strided_slice %7 {offsets = [0, 0, 0], sizes = [8, 8, 4], strides = [1, 1, 1]} : vector<8x8x8xf32> to vector<8x8x4xf32>
    %9 = arith.maximumf %4, %8 : vector<8x8x4xf32>
    %10 = arith.addf %5, %8 : vector<8x8x4xf32>
    %11 = vector.extract_strided_slice %7 {offsets = [0, 0, 4], sizes = [8, 8, 4], strides = [1, 1, 1]} : vector<8x8x8xf32> to vector<8x8x4xf32>
    %12 = arith.maximumf %9, %11 : vector<8x8x4xf32>
    %13 = arith.addf %10, %11 : vector<8x8x4xf32>
    %c0_8 = arith.constant 0 : index
    %c0_9 = arith.constant 0 : index
    %c0_10 = arith.constant 0 : index
    %c0_11 = arith.constant 0 : index
    %c0_12 = arith.constant 0 : index
    %14 = vector.load %arg3[%c0_8, %c0_9, %c0_10, %c0_11, %c0_12] : memref<1x8x2x8x4xf32, #tpu.memory_space<vmem>>, vector<1x8x1x8x4xf32>
    %15 = vector.shape_cast %14 : vector<1x8x1x8x4xf32> to vector<8x8x4xf32>
    %16 = vector.shape_cast %12 : vector<8x8x4xf32> to vector<1x8x1x8x4xf32>
    tpu.vector_store %arg3[%c0_8, %c0_9, %c0_10, %c0_11, %c0_12], %16 {strides = array<i32>} : memref<1x8x2x8x4xf32, #tpu.memory_space<vmem>>, vector<1x8x1x8x4xf32>,
    %cst = arith.constant 2.500000e-01 : f32
    %17 = vector.broadcast %cst : f32 to vector<8x8x4xf32>
    %18 = arith.mulf %13, %17 : vector<8x8x4xf32>
    %c0_13 = arith.constant 0 : index
    %c0_14 = arith.constant 0 : index
    %c1_15 = arith.constant 1 : index
    %c0_16 = arith.constant 0 : index
    %c0_17 = arith.constant 0 : index
    %19 = vector.load %arg3[%c0_13, %c0_14, %c1_15, %c0_16, %c0_17] : memref<1x8x2x8x4xf32, #tpu.memory_space<vmem>>, vector<1x8x1x8x4xf32>
    %20 = vector.shape_cast %19 : vector<1x8x1x8x4xf32> to vector<8x8x4xf32>
    %21 = vector.shape_cast %18 : vector<8x8x4xf32> to vector<1x8x1x8x4xf32>
    tpu.vector_store %arg3[%c0_13, %c0_14, %c1_15, %c0_16, %c0_17], %21 {strides = array<i32>} : memref<1x8x2x8x4xf32, #tpu.memory_space<vmem>>, vector<1x8x1x8x4xf32>,
    return
  }
  func.func @transform_0(%arg0: i32, %arg1: i32) -> (i32, i32, i32, i32, i32) {
    %c0_i32 = arith.constant 0 : i32
    %c0_i32_0 = arith.constant 0 : i32
    %c0_i32_1 = arith.constant 0 : i32
    %c0_i32_2 = arith.constant 0 : i32
    return %arg0, %arg1, %c0_i32, %c0_i32_0, %c0_i32_1 : i32, i32, i32, i32, i32
  }
  func.func @transform_1(%arg0: i32, %arg1: i32) -> (i32, i32, i32, i32, i32) {
    %c0_i32 = arith.constant 0 : i32
    %c0_i32_0 = arith.constant 0 : i32
    %c0_i32_1 = arith.constant 0 : i32
    %c0_i32_2 = arith.constant 0 : i32
    return %arg0, %arg1, %c0_i32, %c0_i32_0, %c0_i32_1 : i32, i32, i32, i32, i32
  }
}

</mosaic_0001>

<bundles_post_ra>
// kernel: tpu_custom_call.1
= control target key start
LH: loop header
LB: loop body
LE: loop exit
PB: predicated region body
PF: predicated region fallthrough
CT: control target
= control target key end

     0   :  { %6 = vsyncpa [#allocation3], 0  ;;  %s814_s0 = inlined_call_operand.hbm [shape: f32[2,8,2,8,8], index: 0, kind: input, shape index: {}]   ;;  %s815_s1 = inlined_call_operand.vmem [shape: f32[2,8,2,8,4], index: 1, kind: output, shape index: {}]  }
   0x1   :  { %8 = vsyncpa [#allocation3 + $0x1], 0  ;;  %s610_s6 = smov 0   ;;  %s612_s7 = smov 0  }
   0x2   :  { %s614_s8 = smov 0   ;;  %s616_s9 = smov 0  }
   0x3   :  { %s618_s10 = smov 0   ;;  %s620_s11 = smov 0  }
   0x4 LB: > { %s426_s12 = sadd.s32 4294967295, %s595_s11   ;;  %s26_s13 = sadd.s32 1, %s591_s10  ;;  %s595_s11 = sphi %s620_s11, %s14_s11   ;;  %s591_s10 = sphi %s618_s10, %s822_s10   ;;  %s587_s9 = sphi %s616_s9, %s821_s9   ;;  %s583_s8 = sphi %s614_s8, %s820_s8   ;;  %s579_s7 = sphi %s612_s7, %s819_s7   ;;  %s575_s6 = sphi %s610_s6, %s818_s6  }
   0x5   : > { %p28_p0 = scmp.ge.s32.totalorder %s26_s13, 2  ;;  %s35_s14 = sadd.s32 1, %s583_s8 }
   0x6   : > { %p42_p1 = scmp.ne.s32.totalorder %s583_s8, %s579_s7  ;;  %p43_p2 = scmp.eq.s32.totalorder %s595_s11, 0 }
   0x7   : > { %s824_s13 = smov (%p28_p0, %s26_s13), 0  ;;  %p48_p4 = scmp.ne.s32.totalorder %s579_s7, %s575_s6 }
   0x8   : > { %p646_p3 = por %p43_p2, %p42_p1  ;;  %s30_s16 = ssub.s32 %s591_s10, %s824_s13 }
   0x9   : > { %p49_p5 = scmp.eq.s32.totalorder %s426_s12, 0  ;;  %p33_p6 = scmp.eq.s32.totalorder %s30_s16, 0 }
   0xa   : > { %p463_p8 = scmp.lt.s32.totalorder %s595_s11, 2  ;;  %s100_s19 = sand.u32 1, %s583_s8  }
   0xb   : > { %p653_p7 = por %p49_p5, %p48_p4  ;;  %s455_s20 = sshll.u32 %s591_s10, 7 }
   0xc   : > { %s659_s18 = scalar_select %p33_p6, %s583_s8, %s35_s14  }
   0xd   : > { %s430_s21 = sshll.u32 %s100_s19, 7  ;;  %s112_s24 = scalar_lea.hbm %s814_s0, %s455_s20 }
   0xe   : > { %s113_s25 = sshll.u32 %s112_s24, 4  ;;  %s104_s26 = scalar_lea.vmem [#allocation2], %s430_s21  ;;  %s114_s25 = int_to_ptr.hbm [resolvable:$true] %s113_s25 }
   0xf   : > { %s115_s27 = sshll.u32 %s104_s26, 4  ;;  %p460_p9 = pnand %p463_p8, %p646_p3  ;;  %s116_s27 = int_to_ptr.vmem [resolvable:$true] %s115_s27 }
  0x10   : > { %p433_p10 = scmp.ge.s32.totalorder %s595_s11, 1  ;;  %p123_p11 = scmp.lt.s32.totalorder %s595_s11, 3 }
  0x11   : > { %s101_s28 = scalar_lea.sflag [#allocation3], %s100_s19  ;;  %s597_s29 = smov 128  }
  0x12   : > { %s598_s30 = smov 8   ;;  %p124_p12 = pnand %p433_p10, %p123_p11 }
  0x13   : > { %462 = dma.hbm_to_vmem [thread:$0]  (!%p460_p9), %s114_s25, 2048, %s116_s27, %s101_s28, %s597_s29, %s597_s29, %s598_s30  }
  0x14   : > { %127 = sbr.rel (%p124_p12) target bundleno = 188 (0xbc), region = 24  ;;  %s129_s2 = sand.u32 (!%p124_p12), 1, %s579_s7  }
  0x15   : > { %s434_s3 = sshll.u32 (!%p124_p12), %s129_s2, 7  ;;  %s130_s4 = scalar_lea.sflag (!%p124_p12), [#allocation3], %s129_s2 }
  0x16   : > { %s671_s5 = scalar_lea.vmem (!%p124_p12), [#allocation2], %s434_s3 }
  0x19   : > { %570 = dma.done.wait (%p653_p7), %s130_s4, 2048  }
  0x1a   : > { %572 = vsyncadd (%p653_p7), %s130_s4, 4294965248  ;;  %v678_v0 = vld [vmem:[%s671_s5 + $0x20] sm:$0xff]  ;;  %s599_s6 = smov 124   ;;  %v173_v3 = vld [vmem:[%s671_s5 + $0x30] sm:$0xff]  ;;  %p160_p13 = scmp.lt.s32.totalorder %s587_s9, 1  ;;  %vm299_vm0 = vcmask 31744  }
  0x1b   : > { %v170_v1 = vld [vmem:[%s671_s5] sm:$0xff]  ;;  %190 = vrot.lane.b32.xlu1 %v678_v0, %s599_s6  ;;  %v691_v4 = vld [vmem:[%s671_s5 + $0x10] sm:$0xff]  ;;  %v437_v8 = vld [vmem:[%s671_s5 + $0x8] sm:$0xff] }
  0x1c   : > { %186 = vrot.lane.b32.xlu0 %v170_v1, %s599_s6  ;;  %v685_v2 = vld [vmem:[%s671_s5 + $0x40] sm:$0xff]  ;;  %v694_v5 = vld [vmem:[%s671_s5 + $0x50] sm:$0xff]  ;;  %v439_v9 = vld [vmem:[%s671_s5 + $0x28] sm:$0xff]  ;;  %s826_s9 = smov (!%p160_p13, %s587_s9), 1 }
  0x1d   : > { %194 = vrot.lane.b32.xlu2 %v685_v2, %s599_s6  ;;  %v702_v6 = vld [vmem:[%s671_s5 + $0x70] sm:$0xff]  ;;  %v176_v7 = vld [vmem:[%s671_s5 + $0x60] sm:$0xff]  ;;  %v438_v10 = vld [vmem:[%s671_s5 + $0x18] sm:$0xff]  ;;  %s456_s12 = sshll.u32 %s826_s9, 7 }
  0x1e   : > { %v440_v11 = vld [vmem:[%s671_s5 + $0x38] sm:$0xff]  ;;  %v720_v13 = vld [vmem:[%s671_s5 + $0x48] sm:$0xff]  ;;  %s742_s16 = scalar_lea.vmem %s815_s1, %s456_s12 }
  0x1f   : > { %v717_v12 = vld [vmem:[%s671_s5 + $0x58] sm:$0xff]  ;;  %v443_v14 = vld [vmem:[%s671_s5 + $0x68] sm:$0xff] }
  0x20   : > { %v729_v15 = vld [vmem:[%s671_s5 + $0x78] sm:$0xff] }
  0x23   : > { %192 = vrot.lane.b32.xlu1 %v173_v3, %s599_s6 }
  0x24   : > { %188 = vrot.lane.b32.xlu0 %v691_v4, %s599_s6 }
  0x25   : > { %196 = vrot.lane.b32.xlu2 %v694_v5, %s599_s6 }
  0x2b   : > { %200 = vrot.lane.b32.xlu1 %v702_v6, %s599_s6 }
  0x2c   : > { %198 = vrot.lane.b32.xlu0 %v176_v7, %s599_s6 }
  0x2d   : > { %259 = vrot.lane.b32.xlu2 %v437_v8, %s599_s6 }
  0x33   : > { %263 = vrot.lane.b32.xlu1 %v439_v9, %s599_s6 }
  0x34   : > { %261 = vrot.lane.b32.xlu0 %v438_v10, %s599_s6 }
  0x35   : > { %265 = vrot.lane.b32.xlu2 %v440_v11, %s599_s6 }
  0x3b   : > { %269 = vrot.lane.b32.xlu1 %v717_v12, %s599_s6 }
  0x3c   : > { %267 = vrot.lane.b32.xlu0 %v720_v13, %s599_s6 }
  0x3d   : > { %271 = vrot.lane.b32.xlu2 %v443_v14, %s599_s6 }
  0x44   : > { %273 = vrot.lane.b32.xlu0 %v729_v15, %s599_s6 }
  0x77   : > { %v733_v16 = vpop.permute.xlu2 %194 }
  0x78   : > { %v214_v62 = vmax.f32 %v685_v2, %v733_v16  ;;  %v222_v63 = vadd.f32 %v733_v16, %v685_v2 }
  0x7f   : > { %v735_v17 = vpop.permute.xlu2 %196 }
  0x87   : > { %v260_v18 = vpop.permute.xlu2 %259 }
  0x8d   : > { %v191_v19 = vpop.permute.xlu1 %190 }
  0x8e   : > { %v187_v20 = vpop.permute.xlu0 %186  ;;  %v212_v42 = vmax.f32 %v678_v0, %v191_v19  ;;  %v220_v43 = vadd.f32 %v191_v19, %v678_v0  ;;  %v215_v0 = vmax.f32 %v694_v5, %v735_v17 }
  0x8f   : > { %v210_v21 = vmax.f32 %v170_v1, %v187_v20  ;;  %v218_v22 = vadd.f32 %v187_v20, %v170_v1  ;;  %v266_v28 = vpop.permute.xlu2 %265  ;;  %v223_v1 = vadd.f32 %v735_v17, %v694_v5  ;;  %v239_v5 = vmax.f32 %v214_v62, %v720_v13 }
  0x90   : > { %v237_v51 = vmax.f32 %v212_v42, %v439_v9  ;;  %v245_v53 = vadd.f32 %v439_v9, %v220_v43  ;;  %v240_v2 = vmax.f32 %v215_v0, %v717_v12 }
  0x91   : > { %v235_v23 = vmax.f32 %v210_v21, %v437_v8  ;;  %v243_v24 = vadd.f32 %v437_v8, %v218_v22  ;;  %v247_v8 = vadd.f32 %v720_v13, %v222_v63 }
  0x93   : > { %v283_v25 = vmax.f32 %v235_v23, %v260_v18  ;;  %v291_v26 = vadd.f32 %v260_v18, %v243_v24 }
  0x95   : > { %300 = vst.msk [vmem:[%s742_s16] sm:$0xff] %vm299_vm0, %v283_v25  ;;  %v308_v27 = vmul.f32 0.25, %v291_v26  ;;  %v193_v29 = vpop.permute.xlu1 %192 }
  0x96   : > { %v189_v30 = vpop.permute.xlu0 %188  ;;  %v213_v31 = vmax.f32 %v173_v3, %v193_v29  ;;  %v221_v32 = vadd.f32 %v193_v29, %v173_v3 }
  0x97   : > { %445 = vst.msk [vmem:[%s742_s16 + $0x8] sm:$0xff] %vm299_vm0, %v308_v27  ;;  %v272_v44 = vpop.permute.xlu2 %271  ;;  %v211_v45 = vmax.f32 %v691_v4, %v189_v30  ;;  %v219_v46 = vadd.f32 %v189_v30, %v691_v4 }
  0x98   : > { %v238_v33 = vmax.f32 %v213_v31, %v440_v11  ;;  %v246_v34 = vadd.f32 %v440_v11, %v221_v32 }
  0x99   : > { %v236_v54 = vmax.f32 %v211_v45, %v438_v10  ;;  %v244_v55 = vadd.f32 %v438_v10, %v219_v46 }
  0x9a   : > { %v286_v35 = vmax.f32 %v238_v33, %v266_v28  ;;  %v294_v36 = vadd.f32 %v266_v28, %v246_v34 }
  0x9c   : > { %303 = vst.msk [vmem:[%s742_s16 + $0x30] sm:$0xff] %vm299_vm0, %v286_v35  ;;  %v311_v37 = vmul.f32 0.25, %v294_v36 }
  0x9d   : > { %v201_v38 = vpop.permute.xlu1 %200 }
  0x9e   : > { %v199_v39 = vpop.permute.xlu0 %198  ;;  %448 = vst.msk [vmem:[%s742_s16 + $0x38] sm:$0xff] %vm299_vm0, %v311_v37  ;;  %v217_v18 = vmax.f32 %v702_v6, %v201_v38  ;;  %v225_v19 = vadd.f32 %v201_v38, %v702_v6 }
  0x9f   : > { %v216_v40 = vmax.f32 %v176_v7, %v199_v39  ;;  %v224_v41 = vadd.f32 %v199_v39, %v176_v7  ;;  %v248_v7 = vadd.f32 %v717_v12, %v223_v1 }
  0xa0   : > { %v242_v13 = vmax.f32 %v217_v18, %v729_v15  ;;  %v250_v21 = vadd.f32 %v729_v15, %v225_v19 }
  0xa1   : > { %v241_v47 = vmax.f32 %v216_v40, %v443_v14  ;;  %v249_v48 = vadd.f32 %v443_v14, %v224_v41 }
  0xa3   : > { %v289_v49 = vmax.f32 %v241_v47, %v272_v44  ;;  %v297_v50 = vadd.f32 %v272_v44, %v249_v48 }
  0xa5   : > { %306 = vst.msk [vmem:[%s742_s16 + $0x60] sm:$0xff] %vm299_vm0, %v289_v49  ;;  %v314_v52 = vmul.f32 0.25, %v297_v50  ;;  %v264_v56 = vpop.permute.xlu1 %263 }
  0xa6   : > { %v262_v57 = vpop.permute.xlu0 %261  ;;  %v285_v58 = vmax.f32 %v237_v51, %v264_v56  ;;  %v293_v59 = vadd.f32 %v264_v56, %v245_v53 }
  0xa7   : > { %451 = vst.msk [vmem:[%s742_s16 + $0x68] sm:$0xff] %vm299_vm0, %v314_v52  ;;  %v284_v60 = vmax.f32 %v236_v54, %v262_v57  ;;  %v292_v61 = vadd.f32 %v262_v57, %v244_v55 }
  0xa8   : > { %302 = vst.msk [vmem:[%s742_s16 + $0x20] sm:$0xff] %vm299_vm0, %v285_v58  ;;  %v310_v3 = vmul.f32 0.25, %v293_v59 }
  0xa9   : > { %v309_v4 = vmul.f32 0.25, %v292_v61  ;;  %301 = vst.msk [vmem:[%s742_s16 + $0x10] sm:$0xff] %vm299_vm0, %v284_v60 }
  0xaa   : > { %447 = vst.msk [vmem:[%s742_s16 + $0x28] sm:$0xff] %vm299_vm0, %v310_v3 }
  0xab   : > { %446 = vst.msk [vmem:[%s742_s16 + $0x18] sm:$0xff] %vm299_vm0, %v309_v4 }
  0xad   : > { %v270_v9 = vpop.permute.xlu1 %269 }
  0xae   : > { %v268_v10 = vpop.permute.xlu0 %267  ;;  %v288_v11 = vmax.f32 %v240_v2, %v270_v9  ;;  %v296_v14 = vadd.f32 %v270_v9, %v248_v7 }
  0xaf   : > { %v287_v16 = vmax.f32 %v239_v5, %v268_v10  ;;  %v295_v17 = vadd.f32 %v268_v10, %v247_v8 }
  0xb0   : > { %305 = vst.msk [vmem:[%s742_s16 + $0x50] sm:$0xff] %vm299_vm0, %v288_v11  ;;  %v313_v12 = vmul.f32 0.25, %v296_v14 }
  0xb1   : > { %v312_v20 = vmul.f32 0.25, %v295_v17  ;;  %304 = vst.msk [vmem:[%s742_s16 + $0x40] sm:$0xff] %vm299_vm0, %v287_v16 }
  0xb2   : > { %450 = vst.msk [vmem:[%s742_s16 + $0x58] sm:$0xff] %vm299_vm0, %v313_v12 }
  0xb3   : > { %449 = vst.msk [vmem:[%s742_s16 + $0x48] sm:$0xff] %vm299_vm0, %v312_v20 }
  0xb6   : > { %v274_v22 = vpop.permute.xlu0 %273 }
  0xb7   : > { %v290_v23 = vmax.f32 %v242_v13, %v274_v22  ;;  %v298_v24 = vadd.f32 %v274_v22, %v250_v21 }
  0xb9   : > { %307 = vst.msk [vmem:[%s742_s16 + $0x70] sm:$0xff] %vm299_vm0, %v290_v23  ;;  %v315_v6 = vmul.f32 0.25, %v298_v24 }
  0xbb   : > { %452 = vst.msk [vmem:[%s742_s16 + $0x78] sm:$0xff] %vm299_vm0, %v315_v6 }
  0xbc PF: > { %s14_s11 = sadd.s32 1, %s595_s11   ;;  %s818_s6 = smov %s579_s7 }
  0xbd   : > { %p11_p0 = scmp.ge.s32.totalorder %s14_s11, 4   ;;  %s819_s7 = smov %s583_s8 }
  0xbe   : > { %s820_s8 = smov %s659_s18  ;;  %s821_s9 = smov %s591_s10 }
  0xbf   : > { %s822_s10 = smov %s824_s13  ;;  %13 = sbr.rel (!%p11_p0) target bundleno = 4 (0x4), region = 66 }
  0xc4   :  { %357 = vsyncpa [#allocation3], 1 }
  0xc5   :  { %359 = vsyncpa [#allocation3 + $0x1], 1 }

</bundles_post_ra>
